<compile_context>
chip_gen: v5e
topology: v5e:2x2
jax: 0.10.0
libtpu: 0.0.40
codegen_flags: <defaults>
</compile_context>

<pallas_src>
import functools

import numpy as np
import jax
import jax.numpy as jnp
from jax import lax
from jax.experimental import pallas as pl
from jax.experimental.pallas import tpu as pltpu

BN_EPS = 1e-5


# ------------------------------ kernel helpers ------------------------------

def _boundary_masks(H, W):
    """Per-tap boundary masks for a 3x3 'same' window in (C, H*W) layout."""
    HW = H * W
    lane = lax.broadcasted_iota(jnp.int32, (1, HW), 1)
    if W > 0 and (W & (W - 1)) == 0:
        col = lane & (W - 1)
    else:
        col = lane % W
    row_ok = [lane >= W, None, lane < HW - W]      # dh = 0, 1, 2
    col_ok = [col >= 1, None, col <= W - 2]        # dw = 0, 1, 2
    masks = []
    for dh in range(3):
        for dw in range(3):
            r, c = row_ok[dh], col_ok[dw]
            if r is None and c is None:
                masks.append(None)
            elif r is None:
                masks.append(c)
            elif c is None:
                masks.append(r)
            else:
                masks.append(jnp.logical_and(r, c))
    return masks


def _conv3x3_taps(y, taps, masks, W, HW):
    """Stride-1 3x3 zero-padded conv (per-channel taps) or box-sum (taps=None).

    y: (C, HW) f32, channels on sublanes, flattened spatial on lanes.  Each tap
    is a pltpu.roll along the lane axis (XLU) plus a boundary mask.
    """
    acc = jnp.zeros(y.shape, jnp.float32)
    for dh in range(3):
        for dw in range(3):
            shift = ((1 - dh) * W + (1 - dw)) % HW
            t = y if shift == 0 else pltpu.roll(y, shift, 1)
            m = masks[3 * dh + dw]
            if m is not None:
                t = jnp.where(m, t, 0.0)
            if taps is not None:
                j = 3 * dh + dw
                t = t * taps[:, j:j + 1]
            acc = acc + t
    return acc


# ------------------------------ Pallas kernels ------------------------------

def _basic_unit_kernel(x_ref, w1_ref, b1_ref, k2_ref, b2_ref, w3_ref, b3_ref,
                       o_ref, *, H, W):
    """Fused non-reduce BasicUnit: conv1(+BN,shuffle folded)+ReLU ->
    3x3 depthwise(+BN) -> conv3(+BN) + residual + ReLU, in (C, H*W) layout."""
    HW = H * W
    masks = _boundary_masks(H, W)
    w1 = w1_ref[...]            # (M, Cin)  dot dtype
    b1 = b1_ref[...]            # (M, 1)    f32
    k2 = k2_ref[...]            # (M, 9)    f32 (BN2 scale folded)
    b2 = b2_ref[...]            # (M, 1)
    w3 = w3_ref[...]            # (Cout, M) dot dtype
    b3 = b3_ref[...]            # (Cout, 1)
    dt = w1.dtype
    nb = x_ref.shape[0]
    for i in range(nb):
        x = x_ref[i]                                             # (Cin, HW) f32
        y1 = jnp.dot(w1, x.astype(dt),
                     preferred_element_type=jnp.float32) + b1
        y1 = jnp.maximum(y1, 0.0)                                # (M, HW)
        y2 = _conv3x3_taps(y1, k2, masks, W, HW) + b2            # (M, HW)
        y3 = jnp.dot(w3, y2.astype(dt),
                     preferred_element_type=jnp.float32) + b3 + x
        o_ref[i] = jnp.maximum(y3, 0.0)


def _basic_unit_reduce_kernel(x_ref, w1_ref, b1_ref, k2_ref, b2_ref, w3_ref,
                              b3_ref, s_ref, o_ref, *, H, W):
    """Fused reduce (stride-2) BasicUnit.  The stride-1 depthwise / box-sum is
    computed at all positions and subsampled with the 0/1 selection matrix
    s_ref (HW, Ho*Wo); conv branch and avgpool branch are written into one
    output ref at fixed channel offsets (fused concat) followed by ReLU."""
    HW = H * W
    masks = _boundary_masks(H, W)
    w1 = w1_ref[...]
    b1 = b1_ref[...]
    k2 = k2_ref[...]
    b2 = b2_ref[...]
    w3 = w3_ref[...]
    b3 = b3_ref[...]
    sel = s_ref[...]                                            # (HW, HoWo) f32
    dt = w1.dtype
    ceff = w3.shape[0]
    nb = x_ref.shape[0]
    for i in range(nb):
        x = x_ref[i]                                            # (Cin, HW) f32
        y1 = jnp.dot(w1, x.astype(dt),
                     preferred_element_type=jnp.float32) + b1
        y1 = jnp.maximum(y1, 0.0)                               # (M, HW)
        y2f = _conv3x3_taps(y1, k2, masks, W, HW)               # stride-1, all pos
        y2 = jnp.dot(y2f, sel, preferred_element_type=jnp.float32) + b2
        y3 = jnp.dot(w3, y2.astype(dt),
                     preferred_element_type=jnp.float32) + b3   # (Ceff, HoWo)
        boxs = _conv3x3_taps(x, None, masks, W, HW)             # 3x3 box sum of x
        pool = jnp.dot(boxs, sel,
                       preferred_element_type=jnp.float32) * (1.0 / 9.0)
        o_ref[i, :ceff, :] = jnp.maximum(y3, 0.0)
        o_ref[i, ceff:, :] = jnp.maximum(pool, 0.0)


# ----------------------------- parameter setup ------------------------------

def grouped_1x1_dense(w_oihw, groups):
    """(Cout, Cin/g, 1, 1) grouped 1x1 conv weight -> dense (Cin, Cout) block-diag."""
    Cout, Cin_g = w_oihw.shape[0], w_oihw.shape[1]
    Cout_g = Cout // groups
    Cin = Cin_g * groups
    dense = jnp.zeros((Cin, Cout), jnp.float32)
    for g in range(groups):
        blk = w_oihw[g * Cout_g:(g + 1) * Cout_g, :, 0, 0]   # (Cout_g, Cin_g)
        dense = dense.at[g * Cin_g:(g + 1) * Cin_g,
                         g * Cout_g:(g + 1) * Cout_g].set(blk.T)
    return dense


def bn_fold(bn):
    gamma, beta, mean, var = bn
    scale = gamma / jnp.sqrt(var + BN_EPS)
    shift = beta - mean * scale
    return scale.astype(jnp.float32), shift.astype(jnp.float32)


def shuffle_perm(C, groups):
    c = C // groups
    return jnp.array([(j % groups) * c + j // groups for j in range(C)],
                     jnp.int32)


def prepare_params(p, n_groups, g1, dot_dtype):
    """Fold BN scale + channel_shuffle into the weights; channels-major form."""
    mid = p['w1'].shape[0]
    out_eff = p['w3'].shape[0]

    s1, b1 = bn_fold(p['bn1'])
    s2, b2 = bn_fold(p['bn2'])
    s3, b3 = bn_fold(p['bn3'])
    perm = shuffle_perm(mid, n_groups)

    w1d = (grouped_1x1_dense(p['w1'], g1) * s1[None, :])[:, perm]   # (Cin, M)
    W1T = w1d.T.astype(dot_dtype)                                   # (M, Cin)
    B1 = b1[perm].reshape(mid, 1)
    K2 = (p['w2'][:, 0] * s2[:, None, None]).reshape(mid, 9)        # (M, 9)
    B2 = b2.reshape(mid, 1)
    w3d = grouped_1x1_dense(p['w3'], n_groups) * s3[None, :]        # (M, out_eff)
    W3T = w3d.T.astype(dot_dtype)                                   # (out_eff, M)
    B3 = b3.reshape(out_eff, 1)
    return W1T, B1, K2, B2, W3T, B3


def _downsample_matrix(H, W):
    """0/1 selection matrix (HW, Ho*Wo): column q picks source (2*ho, 2*wo)."""
    Ho, Wo = H // 2, W // 2
    src = (2 * np.arange(Ho)[:, None] * W + 2 * np.arange(Wo)[None, :]).reshape(-1)
    S = np.zeros((H * W, Ho * Wo), np.float32)
    S[src, np.arange(Ho * Wo)] = 1.0
    return jnp.asarray(S)


def _pick_batch_block(N, bytes_per_image):
    """Largest image-count per grid step that (a) divides N, (b) keeps the
    per-step block small enough for v7x's 64 MiB VMEM with double buffering,
    (c) leaves >= 2 grid steps so both v7x TensorCores get work."""
    budget = 12 << 20          # per-step block budget (~24 MiB double-buffered)
    nb = 1
    for d in range(1, N + 1):
        if N % d:
            continue
        if d * bytes_per_image > budget:
            continue
        if N >= 2 and (N // d) < 2:
            continue
        nb = d
    return nb


def init_params(key, in_c, out_c, n_groups, reduce):
    mid = out_c // 4
    out_eff = out_c - in_c if reduce else out_c
    g1 = 1 if in_c == 24 else n_groups
    ks = jax.random.split(key, 6)

    def bn_init(k, c):
        k1, k2, k3, k4 = jax.random.split(k, 4)
        gamma = jax.random.uniform(k1, (c,), jnp.float32, 0.5, 1.5)
        beta = jax.random.normal(k2, (c,), jnp.float32) * 0.1
        mean = jax.random.normal(k3, (c,), jnp.float32) * 0.1
        var = jax.random.uniform(k4, (c,), jnp.float32, 0.5, 1.5)
        return gamma, beta, mean, var

    return dict(
        g1=g1,
        w1=jax.random.normal(ks[0], (mid, in_c // g1, 1, 1), jnp.float32) * 0.2,
        w2=jax.random.normal(ks[1], (mid, 1, 3, 3), jnp.float32) * 0.2,
        w3=jax.random.normal(ks[2], (out_eff, mid // n_groups, 1, 1), jnp.float32) * 0.2,
        bn1=bn_init(ks[3], mid),
        bn2=bn_init(ks[4], mid),
        bn3=bn_init(ks[5], out_eff),
    )


# ---------------------------- BasicUnit forward ------------------------------

@functools.partial(jax.jit, static_argnames=("n_groups", "reduce", "dot_dtype"))
def basic_unit_pallas(x_nchw, p, *, n_groups, reduce, dot_dtype=jnp.bfloat16):
    N, Cin, H, W = x_nchw.shape
    HW = H * W
    g1 = 1 if Cin == 24 else n_groups
    W1T, B1, K2, B2, W3T, B3 = prepare_params(p, n_groups, g1, dot_dtype)
    mid = W1T.shape[0]
    ceff = W3T.shape[0]

    # NCHW is already channels-major: (N, C, H*W) is a free reshape, no pad.
    x = x_nchw.reshape(N, Cin, HW).astype(jnp.float32)

    wt_specs = [
        pl.BlockSpec(W1T.shape, lambda n: (0, 0)),
        pl.BlockSpec(B1.shape, lambda n: (0, 0)),
        pl.BlockSpec(K2.shape, lambda n: (0, 0)),
        pl.BlockSpec(B2.shape, lambda n: (0, 0)),
        pl.BlockSpec(W3T.shape, lambda n: (0, 0)),
        pl.BlockSpec(B3.shape, lambda n: (0, 0)),
    ]

    if not reduce:
        assert ceff == Cin, "residual add requires out_channels == in_channels"
        out_c, HWo = ceff, HW
        kernel = functools.partial(_basic_unit_kernel, H=H, W=W)
        extra_in, extra_specs = (), []
    else:
        assert H % 2 == 0 and W % 2 == 0
        out_c, HWo = ceff + Cin, (H // 2) * (W // 2)
        S = _downsample_matrix(H, W)
        kernel = functools.partial(_basic_unit_reduce_kernel, H=H, W=W)
        extra_in = (S,)
        extra_specs = [pl.BlockSpec(S.shape, lambda n: (0, 0))]

    bytes_per_img = 4 * HW * (Cin + out_c + 4 * mid)
    nb = _pick_batch_block(N, bytes_per_img)

    out = pl.pallas_call(
        kernel,
        grid=(N // nb,),
        in_specs=[pl.BlockSpec((nb, Cin, HW), lambda n: (n, 0, 0))]
                 + wt_specs + extra_specs,
        out_specs=pl.BlockSpec((nb, out_c, HWo), lambda n: (n, 0, 0)),
        out_shape=jax.ShapeDtypeStruct((N, out_c, HWo), jnp.float32),
        compiler_params=pltpu.CompilerParams(
            dimension_semantics=("parallel",),
            vmem_limit_bytes=48 * 1024 * 1024),
    )(x, W1T, B1, K2, B2, W3T, B3, *extra_in)

    if not reduce:
        return out.reshape(N, out_c, H, W)
    return out.reshape(N, out_c, H // 2, W // 2)


# ----------------------------- pure-JAX reference ----------------------------

def _bn_ref(y, bn):
    gamma, beta, mean, var = bn
    rs = lambda v: v.reshape(1, -1, 1, 1)
    return (y - rs(mean)) / jnp.sqrt(rs(var) + BN_EPS) * rs(gamma) + rs(beta)


def _channel_shuffle_ref(x, g):
    N, C, H, W = x.shape
    return x.reshape(N, g, C // g, H, W).transpose(0, 2, 1, 3, 4).reshape(N, C, H, W)


def basic_unit_ref(x, p, n_groups, reduce):
    dn = ('NCHW', 'OIHW', 'NCHW')
    y = lax.conv_general_dilated(x, p['w1'], (1, 1), 'VALID',
                                 dimension_numbers=dn, feature_group_count=p['g1'])
    y = jnp.maximum(_bn_ref(y, p['bn1']), 0.0)
    y = _channel_shuffle_ref(y, n_groups)
    s = (2, 2) if reduce else (1, 1)
    y = lax.conv_general_dilated(y, p['w2'], s, [(1, 1), (1, 1)],
                                 dimension_numbers=dn, feature_group_count=y.shape[1])
    y = _bn_ref(y, p['bn2'])
    y = lax.conv_general_dilated(y, p['w3'], (1, 1), 'VALID',
                                 dimension_numbers=dn, feature_group_count=n_groups)
    y = _bn_ref(y, p['bn3'])
    if reduce:
        pooled = lax.reduce_window(x, 0.0, lax.add, (1, 1, 3, 3), (1, 1, 2, 2),
                                   [(0, 0), (0, 0), (1, 1), (1, 1)]) / 9.0
        y = jnp.concatenate([y, pooled], axis=1)
    else:
        y = y + x
    return jnp.maximum(y, 0.0)


# ------------------------------------ main -----------------------------------

if __name__ == "__main__":
    key = jax.random.PRNGKey(0)
    kx, kpa, kpb = jax.random.split(key, 3)

    N, C, H, W = 2, 16, 16, 16
    n_groups = 4
    x = jax.random.normal(kx, (N, C, H, W), jnp.float32)

    # Unit A: reduce=False (residual add; out_channels == in_channels).
    pA = init_params(kpa, C, C, n_groups, reduce=False)
    refA = basic_unit_ref(x, pA, n_groups, False)
    outA = basic_unit_pallas(x, pA, n_groups=n_groups, reduce=False,
                             dot_dtype=jnp.float32)
    jax.block_until_ready(outA)
    assert outA.shape == (N, C, H, W)
    assert bool(jnp.allclose(outA, refA, atol=2e-3, rtol=2e-3)), "reduce=False f32 mismatch"
    outA_bf = basic_unit_pallas(x, pA, n_groups=n_groups, reduce=False)  # bf16 MXU path
    jax.block_until_ready(outA_bf)
    assert bool(jnp.allclose(outA_bf, refA, atol=1e-1, rtol=1e-1)), "reduce=False bf16 mismatch"

    # Unit B: reduce=True (stride-2 depthwise + fused avgpool concat).
    out_c = 32
    pB = init_params(kpb, C, out_c, n_groups, reduce=True)
    refB = basic_unit_ref(x, pB, n_groups, True)
    outB = basic_unit_pallas(x, pB, n_groups=n_groups, reduce=True,
                             dot_dtype=jnp.float32)
    jax.block_until_ready(outB)
    assert outB.shape == (N, out_c, H // 2, W // 2)
    assert bool(jnp.allclose(outB, refB, atol=2e-3, rtol=2e-3)), "reduce=True f32 mismatch"
    outB_bf = basic_unit_pallas(x, pB, n_groups=n_groups, reduce=True)
    jax.block_until_ready(outB_bf)
    assert bool(jnp.allclose(outB_bf, refB, atol=1e-1, rtol=1e-1)), "reduce=True bf16 mismatch"

    print("KERNEL_OK")
</pallas_src>

<mosaic_0001>
module attributes {stable_mosaic.version = 11 : i64} {
  func.func @_basic_unit_kernel(%arg0: i32, %arg1: memref<1x16x256xf32, #tpu.memory_space<vmem>>, %arg2: memref<4x16xf32, #tpu.memory_space<vmem>>, %arg3: memref<4x1xf32, #tpu.memory_space<vmem>>, %arg4: memref<4x9xf32, #tpu.memory_space<vmem>>, %arg5: memref<4x1xf32, #tpu.memory_space<vmem>>, %arg6: memref<16x4xf32, #tpu.memory_space<vmem>>, %arg7: memref<16x1xf32, #tpu.memory_space<vmem>>, %arg8: memref<1x16x256xf32, #tpu.memory_space<vmem>>) attributes {dimension_semantics = [#tpu.dimension_semantics<parallel>], iteration_bounds = array<i64: 2>, scalar_prefetch = 0 : i64, scratch_operands = 0 : i64, tpu.core_type = #tpu.core_type<tc>, window_params = [{transform_indices = @transform_0, window_bounds = array<i64: 1, 16, 256>}, {pipeline_mode = #tpu.pipeline_mode<synchronous>, transform_indices = @transform_1, window_bounds = array<i64: 4, 16>}, {pipeline_mode = #tpu.pipeline_mode<synchronous>, transform_indices = @transform_2, window_bounds = array<i64: 4, 1>}, {pipeline_mode = #tpu.pipeline_mode<synchronous>, transform_indices = @transform_3, window_bounds = array<i64: 4, 9>}, {pipeline_mode = #tpu.pipeline_mode<synchronous>, transform_indices = @transform_4, window_bounds = array<i64: 4, 1>}, {pipeline_mode = #tpu.pipeline_mode<synchronous>, transform_indices = @transform_5, window_bounds = array<i64: 16, 4>}, {pipeline_mode = #tpu.pipeline_mode<synchronous>, transform_indices = @transform_6, window_bounds = array<i64: 16, 1>}, {transform_indices = @transform_7, window_bounds = array<i64: 1, 16, 256>}]} {
    %0 = tpu.iota {dimensions = array<i32: 1>} : vector<1x256xi32>
    %c15_i32 = arith.constant 15 : i32
    %1 = vector.broadcast %c15_i32 : i32 to vector<1x256xi32>
    %2 = arith.andi %0, %1 : vector<1x256xi32>
    %c16_i32 = arith.constant 16 : i32
    %3 = vector.broadcast %c16_i32 : i32 to vector<1x256xi32>
    %4 = arith.cmpi sge, %0, %3 : vector<1x256xi32>
    %c240_i32 = arith.constant 240 : i32
    %5 = vector.broadcast %c240_i32 : i32 to vector<1x256xi32>
    %6 = arith.cmpi slt, %0, %5 : vector<1x256xi32>
    %c1_i32 = arith.constant 1 : i32
    %7 = vector.broadcast %c1_i32 : i32 to vector<1x256xi32>
    %8 = arith.cmpi sge, %2, %7 : vector<1x256xi32>
    %c14_i32 = arith.constant 14 : i32
    %9 = vector.broadcast %c14_i32 : i32 to vector<1x256xi32>
    %10 = arith.cmpi sle, %2, %9 : vector<1x256xi32>
    %11 = arith.andi %4, %8 : vector<1x256xi1>
    %12 = arith.andi %4, %10 : vector<1x256xi1>
    %13 = arith.andi %6, %8 : vector<1x256xi1>
    %14 = arith.andi %6, %10 : vector<1x256xi1>
    %c0 = arith.constant 0 : index
    %c0_0 = arith.constant 0 : index
    %15 = vector.load %arg2[%c0, %c0_0] : memref<4x16xf32, #tpu.memory_space<vmem>>, vector<4x16xf32>
    %c0_1 = arith.constant 0 : index
    %c0_2 = arith.constant 0 : index
    %16 = vector.load %arg3[%c0_1, %c0_2] : memref<4x1xf32, #tpu.memory_space<vmem>>, vector<4x1xf32>
    %c0_3 = arith.constant 0 : index
    %c0_4 = arith.constant 0 : index
    %17 = vector.load %arg4[%c0_3, %c0_4] : memref<4x9xf32, #tpu.memory_space<vmem>>, vector<4x9xf32>
    %c0_5 = arith.constant 0 : index
    %c0_6 = arith.constant 0 : index
    %18 = vector.load %arg5[%c0_5, %c0_6] : memref<4x1xf32, #tpu.memory_space<vmem>>, vector<4x1xf32>
    %c0_7 = arith.constant 0 : index
    %c0_8 = arith.constant 0 : index
    %19 = vector.load %arg6[%c0_7, %c0_8] : memref<16x4xf32, #tpu.memory_space<vmem>>, vector<16x4xf32>
    %c0_9 = arith.constant 0 : index
    %c0_10 = arith.constant 0 : index
    %20 = vector.load %arg7[%c0_9, %c0_10] : memref<16x1xf32, #tpu.memory_space<vmem>>, vector<16x1xf32>
    %c0_11 = arith.constant 0 : index
    %c0_12 = arith.constant 0 : index
    %c0_13 = arith.constant 0 : index
    %21 = vector.load %arg1[%c0_11, %c0_12, %c0_13] : memref<1x16x256xf32, #tpu.memory_space<vmem>>, vector<1x16x256xf32>
    %22 = vector.shape_cast %21 : vector<1x16x256xf32> to vector<16x256xf32>
    %cst = arith.constant dense<0.000000e+00> : vector<4x256xf32>
    %23 = tpu.matmul %15, %22, %cst {dimension_numbers = #tpu.dot_dimension_numbers<[1], [0], [0], [1], [0, 0, 1, 1], [], []>} : vector<4x16xf32>, vector<16x256xf32>, vector<4x256xf32> -> vector<4x256xf32>
    %24 = vector.broadcast %16 : vector<4x1xf32> to vector<4x256xf32>
    %25 = arith.addf %23, %24 : vector<4x256xf32>
    %cst_14 = arith.constant 0.000000e+00 : f32
    %26 = vector.broadcast %cst_14 : f32 to vector<4x256xf32>
    %27 = arith.maximumf %25, %26 : vector<4x256xf32>
    %cst_15 = arith.constant 0.000000e+00 : f32
    %28 = vector.broadcast %cst_15 : f32 to vector<4x256xf32>
    %c17_i32 = arith.constant 17 : i32
    %29 = tpu.dynamic_rotate %27 by %c17_i32 dim 1 : vector<4x256xf32>, i32 -> vector<4x256xf32>
    %cst_16 = arith.constant 0.000000e+00 : f32
    %30 = vector.shape_cast %11 : vector<1x256xi1> to vector<1x256xi1>
    %31 = vector.broadcast %30 : vector<1x256xi1> to vector<4x256xi1>
    %32 = vector.broadcast %cst_16 : f32 to vector<4x256xf32>
    %33 = arith.select %31, %29, %32 : vector<4x256xi1>, vector<4x256xf32>
    %34 = vector.extract_strided_slice %17 {offsets = [0, 0], sizes = [4, 1], strides = [1, 1]} : vector<4x9xf32> to vector<4x1xf32>
    %35 = vector.broadcast %34 : vector<4x1xf32> to vector<4x256xf32>
    %36 = arith.mulf %33, %35 : vector<4x256xf32>
    %37 = arith.addf %28, %36 : vector<4x256xf32>
    %c16_i32_17 = arith.constant 16 : i32
    %38 = tpu.dynamic_rotate %27 by %c16_i32_17 dim 1 : vector<4x256xf32>, i32 -> vector<4x256xf32>
    %cst_18 = arith.constant 0.000000e+00 : f32
    %39 = vector.shape_cast %4 : vector<1x256xi1> to vector<1x256xi1>
    %40 = vector.broadcast %39 : vector<1x256xi1> to vector<4x256xi1>
    %41 = vector.broadcast %cst_18 : f32 to vector<4x256xf32>
    %42 = arith.select %40, %38, %41 : vector<4x256xi1>, vector<4x256xf32>
    %43 = vector.extract_strided_slice %17 {offsets = [0, 1], sizes = [4, 1], strides = [1, 1]} : vector<4x9xf32> to vector<4x1xf32>
    %44 = vector.broadcast %43 : vector<4x1xf32> to vector<4x256xf32>
    %45 = arith.mulf %42, %44 : vector<4x256xf32>
    %46 = arith.addf %37, %45 : vector<4x256xf32>
    %c15_i32_19 = arith.constant 15 : i32
    %47 = tpu.dynamic_rotate %27 by %c15_i32_19 dim 1 : vector<4x256xf32>, i32 -> vector<4x256xf32>
    %cst_20 = arith.constant 0.000000e+00 : f32
    %48 = vector.shape_cast %12 : vector<1x256xi1> to vector<1x256xi1>
    %49 = vector.broadcast %48 : vector<1x256xi1> to vector<4x256xi1>
    %50 = vector.broadcast %cst_20 : f32 to vector<4x256xf32>
    %51 = arith.select %49, %47, %50 : vector<4x256xi1>, vector<4x256xf32>
    %52 = vector.extract_strided_slice %17 {offsets = [0, 2], sizes = [4, 1], strides = [1, 1]} : vector<4x9xf32> to vector<4x1xf32>
    %53 = vector.broadcast %52 : vector<4x1xf32> to vector<4x256xf32>
    %54 = arith.mulf %51, %53 : vector<4x256xf32>
    %55 = arith.addf %46, %54 : vector<4x256xf32>
    %c1_i32_21 = arith.constant 1 : i32
    %56 = tpu.dynamic_rotate %27 by %c1_i32_21 dim 1 : vector<4x256xf32>, i32 -> vector<4x256xf32>
    %cst_22 = arith.constant 0.000000e+00 : f32
    %57 = vector.shape_cast %8 : vector<1x256xi1> to vector<1x256xi1>
    %58 = vector.broadcast %57 : vector<1x256xi1> to vector<4x256xi1>
    %59 = vector.broadcast %cst_22 : f32 to vector<4x256xf32>
    %60 = arith.select %58, %56, %59 : vector<4x256xi1>, vector<4x256xf32>
    %61 = vector.extract_strided_slice %17 {offsets = [0, 3], sizes = [4, 1], strides = [1, 1]} : vector<4x9xf32> to vector<4x1xf32>
    %62 = vector.broadcast %61 : vector<4x1xf32> to vector<4x256xf32>
    %63 = arith.mulf %60, %62 : vector<4x256xf32>
    %64 = arith.addf %55, %63 : vector<4x256xf32>
    %65 = vector.extract_strided_slice %17 {offsets = [0, 4], sizes = [4, 1], strides = [1, 1]} : vector<4x9xf32> to vector<4x1xf32>
    %66 = vector.broadcast %65 : vector<4x1xf32> to vector<4x256xf32>
    %67 = arith.mulf %27, %66 : vector<4x256xf32>
    %68 = arith.addf %64, %67 : vector<4x256xf32>
    %c255_i32 = arith.constant 255 : i32
    %69 = tpu.dynamic_rotate %27 by %c255_i32 dim 1 : vector<4x256xf32>, i32 -> vector<4x256xf32>
    %cst_23 = arith.constant 0.000000e+00 : f32
    %70 = vector.shape_cast %10 : vector<1x256xi1> to vector<1x256xi1>
    %71 = vector.broadcast %70 : vector<1x256xi1> to vector<4x256xi1>
    %72 = vector.broadcast %cst_23 : f32 to vector<4x256xf32>
    %73 = arith.select %71, %69, %72 : vector<4x256xi1>, vector<4x256xf32>
    %74 = vector.extract_strided_slice %17 {offsets = [0, 5], sizes = [4, 1], strides = [1, 1]} : vector<4x9xf32> to vector<4x1xf32>
    %75 = vector.broadcast %74 : vector<4x1xf32> to vector<4x256xf32>
    %76 = arith.mulf %73, %75 : vector<4x256xf32>
    %77 = arith.addf %68, %76 : vector<4x256xf32>
    %c241_i32 = arith.constant 241 : i32
    %78 = tpu.dynamic_rotate %27 by %c241_i32 dim 1 : vector<4x256xf32>, i32 -> vector<4x256xf32>
    %cst_24 = arith.constant 0.000000e+00 : f32
    %79 = vector.shape_cast %13 : vector<1x256xi1> to vector<1x256xi1>
    %80 = vector.broadcast %79 : vector<1x256xi1> to vector<4x256xi1>
    %81 = vector.broadcast %cst_24 : f32 to vector<4x256xf32>
    %82 = arith.select %80, %78, %81 : vector<4x256xi1>, vector<4x256xf32>
    %83 = vector.extract_strided_slice %17 {offsets = [0, 6], sizes = [4, 1], strides = [1, 1]} : vector<4x9xf32> to vector<4x1xf32>
    %84 = vector.broadcast %83 : vector<4x1xf32> to vector<4x256xf32>
    %85 = arith.mulf %82, %84 : vector<4x256xf32>
    %86 = arith.addf %77, %85 : vector<4x256xf32>
    %c240_i32_25 = arith.constant 240 : i32
    %87 = tpu.dynamic_rotate %27 by %c240_i32_25 dim 1 : vector<4x256xf32>, i32 -> vector<4x256xf32>
    %cst_26 = arith.constant 0.000000e+00 : f32
    %88 = vector.shape_cast %6 : vector<1x256xi1> to vector<1x256xi1>
    %89 = vector.broadcast %88 : vector<1x256xi1> to vector<4x256xi1>
    %90 = vector.broadcast %cst_26 : f32 to vector<4x256xf32>
    %91 = arith.select %89, %87, %90 : vector<4x256xi1>, vector<4x256xf32>
    %92 = vector.extract_strided_slice %17 {offsets = [0, 7], sizes = [4, 1], strides = [1, 1]} : vector<4x9xf32> to vector<4x1xf32>
    %93 = vector.broadcast %92 : vector<4x1xf32> to vector<4x256xf32>
    %94 = arith.mulf %91, %93 : vector<4x256xf32>
    %95 = arith.addf %86, %94 : vector<4x256xf32>
    %c239_i32 = arith.constant 239 : i32
    %96 = tpu.dynamic_rotate %27 by %c239_i32 dim 1 : vector<4x256xf32>, i32 -> vector<4x256xf32>
    %cst_27 = arith.constant 0.000000e+00 : f32
    %97 = vector.shape_cast %14 : vector<1x256xi1> to vector<1x256xi1>
    %98 = vector.broadcast %97 : vector<1x256xi1> to vector<4x256xi1>
    %99 = vector.broadcast %cst_27 : f32 to vector<4x256xf32>
    %100 = arith.select %98, %96, %99 : vector<4x256xi1>, vector<4x256xf32>
    %101 = vector.extract_strided_slice %17 {offsets = [0, 8], sizes = [4, 1], strides = [1, 1]} : vector<4x9xf32> to vector<4x1xf32>
    %102 = vector.broadcast %101 : vector<4x1xf32> to vector<4x256xf32>
    %103 = arith.mulf %100, %102 : vector<4x256xf32>
    %104 = arith.addf %95, %103 : vector<4x256xf32>
    %105 = vector.broadcast %18 : vector<4x1xf32> to vector<4x256xf32>
    %106 = arith.addf %104, %105 : vector<4x256xf32>
    %cst_28 = arith.constant dense<0.000000e+00> : vector<16x256xf32>
    %107 = tpu.matmul %19, %106, %cst_28 {dimension_numbers = #tpu.dot_dimension_numbers<[1], [0], [0], [1], [0, 0, 1, 1], [], []>} : vector<16x4xf32>, vector<4x256xf32>, vector<16x256xf32> -> vector<16x256xf32>
    %108 = vector.broadcast %20 : vector<16x1xf32> to vector<16x256xf32>
    %109 = arith.addf %107, %108 : vector<16x256xf32>
    %110 = arith.addf %109, %22 : vector<16x256xf32>
    %cst_29 = arith.constant 0.000000e+00 : f32
    %111 = vector.broadcast %cst_29 : f32 to vector<16x256xf32>
    %112 = arith.maximumf %110, %111 : vector<16x256xf32>
    %c0_30 = arith.constant 0 : index
    %c0_31 = arith.constant 0 : index
    %c0_32 = arith.constant 0 : index
    %113 = vector.load %arg8[%c0_30, %c0_31, %c0_32] : memref<1x16x256xf32, #tpu.memory_space<vmem>>, vector<1x16x256xf32>
    %114 = vector.shape_cast %113 : vector<1x16x256xf32> to vector<16x256xf32>
    %115 = vector.shape_cast %112 : vector<16x256xf32> to vector<1x16x256xf32>
    tpu.vector_store %arg8[%c0_30, %c0_31, %c0_32], %115 {strides = array<i32>} : memref<1x16x256xf32, #tpu.memory_space<vmem>>, vector<1x16x256xf32>,
    return
  }
  func.func @transform_0(%arg0: i32) -> (i32, i32, i32) {
    %c0_i32 = arith.constant 0 : i32
    %c0_i32_0 = arith.constant 0 : i32
    %c0_i32_1 = arith.constant 0 : i32
    return %arg0, %c0_i32, %c0_i32_0 : i32, i32, i32
  }
  func.func @transform_1(%arg0: i32) -> (i32, i32) {
    %c0_i32 = arith.constant 0 : i32
    %c0_i32_0 = arith.constant 0 : i32
    %c0_i32_1 = arith.constant 0 : i32
    return %c0_i32, %c0_i32_0 : i32, i32
  }
  func.func @transform_2(%arg0: i32) -> (i32, i32) {
    %c0_i32 = arith.constant 0 : i32
    %c0_i32_0 = arith.constant 0 : i32
    %c0_i32_1 = arith.constant 0 : i32
    return %c0_i32, %c0_i32_0 : i32, i32
  }
  func.func @transform_3(%arg0: i32) -> (i32, i32) {
    %c0_i32 = arith.constant 0 : i32
    %c0_i32_0 = arith.constant 0 : i32
    %c0_i32_1 = arith.constant 0 : i32
    return %c0_i32, %c0_i32_0 : i32, i32
  }
  func.func @transform_4(%arg0: i32) -> (i32, i32) {
    %c0_i32 = arith.constant 0 : i32
    %c0_i32_0 = arith.constant 0 : i32
    %c0_i32_1 = arith.constant 0 : i32
    return %c0_i32, %c0_i32_0 : i32, i32
  }
  func.func @transform_5(%arg0: i32) -> (i32, i32) {
    %c0_i32 = arith.constant 0 : i32
    %c0_i32_0 = arith.constant 0 : i32
    %c0_i32_1 = arith.constant 0 : i32
    return %c0_i32, %c0_i32_0 : i32, i32
  }
  func.func @transform_6(%arg0: i32) -> (i32, i32) {
    %c0_i32 = arith.constant 0 : i32
    %c0_i32_0 = arith.constant 0 : i32
    %c0_i32_1 = arith.constant 0 : i32
    return %c0_i32, %c0_i32_0 : i32, i32
  }
  func.func @transform_7(%arg0: i32) -> (i32, i32, i32) {
    %c0_i32 = arith.constant 0 : i32
    %c0_i32_0 = arith.constant 0 : i32
    %c0_i32_1 = arith.constant 0 : i32
    return %arg0, %c0_i32, %c0_i32_0 : i32, i32, i32
  }
}

</mosaic_0001>

<bundles_post_ra>
// kernel: basic_unit_pallas.1
= control target key start
LH: loop header
LB: loop body
LE: loop exit
PB: predicated region body
PF: predicated region fallthrough
CT: control target
= control target key end

     0   :  { %s808_s24 = smov 0   ;;  %s1021_s0 = inlined_call_operand.vmem [shape: f32[2,16,256], index: 0, kind: input, shape index: {}]   ;;  %s1022_s1 = inlined_call_operand.vmem [shape: f32[4,16], index: 1, kind: input, shape index: {}]   ;;  %s1023_s2 = inlined_call_operand.vmem [shape: f32[4,1], index: 2, kind: input, shape index: {}]   ;;  %s1024_s3 = inlined_call_operand.vmem [shape: f32[4,9], index: 3, kind: input, shape index: {}]   ;;  %s1025_s4 = inlined_call_operand.vmem [shape: f32[4,1], index: 4, kind: input, shape index: {}]   ;;  %s1026_s5 = inlined_call_operand.vmem [shape: f32[16,4], index: 5, kind: input, shape index: {}]   ;;  %s1027_s6 = inlined_call_operand.vmem [shape: f32[16,1], index: 6, kind: input, shape index: {}]   ;;  %s1028_s7 = inlined_call_operand.vmem [shape: f32[2,16,256], index: 7, kind: output, shape index: {}]  }
   0x1 LB: > { %s684_s25 = sadd.s32 4294967295, %s749_s24   ;;  %p688_p0 = scmp.ge.s32.totalorder %s749_s24, 1  ;;  %s749_s24 = sphi %s808_s24, %s17_s24  }
   0x2   : > { %p237_p1 = scmp.lt.s32.totalorder %s749_s24, 3 }
   0x4   : > { %p238_p2 = pnand %p688_p0, %p237_p1 }
   0x5   : > { %p269_p3 = scmp.lt.s32.totalorder (!%p238_p2), %s684_s25, 1  ;;  %s758_s13 = smov (!%p238_p2), 16  }
   0x6   : > { %241 = sbr.rel (%p238_p2) target bundleno = 469 (0x1d5), region = 48  ;;  %s759_s14 = smov (!%p238_p2), 17  }
   0x7   : > { %s760_s15 = smov (!%p238_p2), 15   ;;  %s761_s16 = smov (!%p238_p2), 1  }
   0x8   : > { %s762_s17 = smov (!%p238_p2), 127   ;;  %s764_s18 = smov (!%p238_p2), 113  }
   0x9   : > { %s766_s19 = smov (!%p238_p2), 112   ;;  %s767_s20 = smov (!%p238_p2), 111  }
   0xb   : > { %v751_v0 = vmov 0   ;;  %v301_v1 = vld [vmem:[%s1023_s2] sm:$0xf]  ;;  %s1044_s25 = smov (!%p269_p3, %s684_s25), 1  ;;  %v752_v3 = vmov 2   ;;  %vm317_vm0 = vcmask 130048   ;;  %v279_v36 = vlaneseq }
   0xc   : > { %730 = vset.pattern.permute.xlu0 %v751_v0  ;;  %731 = vset.pattern.permute.xlu2 %v751_v0  ;;  %v824_v2 = vld [vmem:[%s1024_s3] sm:$0xf]  ;;  %s703_s30 = sshll.u32 %s1044_s25, 5  ;;  %v753_v9 = vmov 4   ;;  %v754_v10 = vmov 3   ;;  %v755_v11 = vmov 5  }
   0xd   : > { %314 = vperm.xlu0 %730, %v301_v1   ;;  %378 = vperm.xlu2 %731, %v824_v2   ;;  %s273_s10 = scalar_lea.vmem %s1021_s0, %s703_s30  ;;  %v300_v8 = vld [vmem:[%s1022_s1] sm:$0xf]  ;;  %v756_v12 = vmov 6   ;;  %v757_v13 = vmov 1   ;;  %v763_v21 = vmov 7   ;;  %v765_v22 = vmov 8  }
   0xe   : > { %733 = vset.pattern.permute.xlu1 %v752_v3  ;;  %v836_v4 = vld [vmem:[%s273_s10 + $0x10] sm:$0xff]  ;;  %v838_v5 = vld [vmem:[%s273_s10 + $0x18] sm:$0xff]  ;;  %v840_v6 = vld [vmem:[%s273_s10] sm:$0xff]  ;;  %v892_v37 = vand.u32 127, %v279_v36 }
   0xf   : > { %420 = vperm.xlu1 %733, %v824_v2   ;;  %335 = vmatpush.msra.mxu0 %v836_v4  ;;  %v844_v7 = vld [vmem:[%s273_s10 + $0x8] sm:$0xff]  ;;  %v303_v23 = vld [vmem:[%s1025_s4] sm:$0xf] }
  0x10   : > { %355 = vmatpush.msra.mxu1 %v838_v5  ;;  %v895_v40 = vadd.s32 128, %v892_v37  ;;  %v282_v41 = vand.u32 15, %v892_v37  ;;  %vm389_vm1 = vcmp.lt.s32.totalorder %v892_v37, 16  ;;  %vm284_vm2 = vcmp.ge.s32.totalorder %v892_v37, 16  ;;  %v305_v45 = vld [vmem:[%s1026_s5 + $0x8] sm:$0xff] }
  0x11   : > { %336 = vmatpush.msra.mxu0 %v840_v6  ;;  %vm367_vm4 = vcmp.lt.s32.totalorder %v892_v37, 17  ;;  %vm410_vm6 = vcmp.lt.s32.totalorder %v892_v37, 15  ;;  %vm431_vm11 = vcmp.lt.s32.totalorder %v892_v37, 1  ;;  %vm460_vm12 = vcmp.lt.s32.totalorder %v892_v37, 127 }
  0x12   : > { %356 = vmatpush.msra.mxu1 %v844_v7  ;;  %693 = vmatmul.msk.f32.vlgmr.msra.gmra.mxu0 %vm317_vm0, %v300_v8  ;;  %v283_v43 = vand.u32 15, %v895_v40  ;;  %vm901_vm3 = vcmp.ge.s32.totalorder %v282_v41, 1  ;;  %vm906_vm5 = vcmp.le.s32.totalorder %v282_v41, 14  ;;  %vm287_vm13 = vcmp.lt.s32.totalorder %v895_v40, 240 }
  0x13   : > { %694 = vmatmul.msk.f32.vlgmr.msra.gmra.mxu1 %vm317_vm0, %v300_v8  ;;  %vm921_vm8 = vmand %vm284_vm2, %vm901_vm3  ;;  %vm481_vm14 = vcmp.lt.s32.totalorder %v892_v37, 113  ;;  %vm502_vm15 = vcmp.lt.s32.totalorder %v892_v37, 112 }
  0x14   : > { %vm913_vm7 = vcmp.ge.s32.totalorder %v283_v43, 1  ;;  %vm925_vm9 = vcmp.le.s32.totalorder %v283_v43, 14  ;;  %vm933_vm10 = vmand %vm284_vm2, %vm906_vm5 }
  0x15   : > { %735 = vset.pattern.permute.xlu2 %v753_v9  ;;  %732 = vset.pattern.permute.xlu0 %v757_v13  ;;  %vm970_vm0 = vmand %vm287_vm13, %vm913_vm7 }
  0x16   : > { %449 = vperm.xlu2 %735, %v824_v2   ;;  %399 = vperm.xlu0 %732, %v824_v2  }
  0x17   : > { %734 = vset.pattern.permute.xlu1 %v754_v10 }
  0x18   : > { %441 = vperm.xlu1 %734, %v824_v2  }
  0x1e   : > { %736 = vset.pattern.permute.xlu2 %v755_v11  ;;  %740 = vset.pattern.permute.xlu0 %v751_v0 }
  0x1f   : > { %470 = vperm.xlu2 %736, %v824_v2  }
  0x20   : > { %741 = vset.pattern.permute.xlu1 %v751_v0 }
  0x27   : > { %737 = vset.pattern.permute.xlu2 %v756_v12 }
  0x28   : > { %491 = vperm.xlu2 %737, %v824_v2  }
  0x30   : > { %738 = vset.pattern.permute.xlu2 %v763_v21 }
  0x67   : > { %v379_v24 = vpop.permute.xlu2 %378 }
  0x70   : > { %v884_v26 = vpop.permute.xlu2 %449 }
  0x79   : > { %v886_v27 = vpop.permute.xlu2 %470 }
  0x7f   : > { %v315_v14 = vpop.permute.xlu0 %314 }
  0x81   : > { %v421_v25 = vpop.permute.xlu1 %420 }
  0x82   : > { %v890_v30 = vpop.permute.xlu2 %491 }
  0x88   : > { %v400_v29 = vpop.permute.xlu0 %399 }
  0x8a   : > { %v888_v28 = vpop.permute.xlu1 %441 }
  0x8f   : > { %v338_v15 = vpop.f32.mrf.mxu0 }
  0x90   : > { %v358_v16 = vpop.f32.mrf.mxu1  ;;  %v339_v17 = vadd.f32 %v338_v15, %v315_v14  ;;  %v307_v15 = vld [vmem:[%s1027_s6 + $0x8] sm:$0xff] }
  0x91   : > { %v359_v18 = vadd.f32 %v358_v16, %v315_v14  ;;  %v306_v14 = vld [vmem:[%s1027_s6] sm:$0xff] }
  0x92   : > { %v858_v19 = vmax.f32 %v339_v17, 0.0 }
  0x93   : > { %v860_v20 = vmax.f32 %v359_v18, 0.0 }
  0x94   : > { %363 = vrot.lane.b32.xlu0 %v858_v19, %s759_s14 }
  0x95   : > { %387 = vrot.lane.b32.xlu2 %v860_v20, %s758_s13  ;;  %365 = vrot.lane.b32.xlu1 %v860_v20, %s759_s14 }
  0x9c   : > { %429 = vrot.lane.b32.xlu0 %v860_v20, %s761_s16 }
  0x9d   : > { %408 = vrot.lane.b32.xlu2 %v860_v20, %s760_s15  ;;  %385 = vrot.lane.b32.xlu1 %v858_v19, %s758_s13  ;;  %s278_s13 = scalar_lea.vmem %s1028_s7, %s703_s30 }
  0xa4   : > { %456 = vrot.lane.b32.xlu0 %v858_v19, %s762_s17 }
  0xa5   : > { %427 = vrot.lane.b32.xlu2 %v858_v19, %s761_s16  ;;  %406 = vrot.lane.b32.xlu1 %v858_v19, %s760_s15 }
  0xac   : > { %477 = vrot.lane.b32.xlu0 %v858_v19, %s764_s18 }
  0xad   : > { %458 = vrot.lane.b32.xlu1 %v860_v20, %s762_s17  ;;  %512 = vperm.xlu2 %738, %v824_v2  }
  0xb4   : > { %498 = vrot.lane.b32.xlu0 %v858_v19, %s766_s19 }
  0xb5   : > { %479 = vrot.lane.b32.xlu1 %v860_v20, %s764_s18  ;;  %739 = vset.pattern.permute.xlu2 %v765_v22 }
  0xb6   : > { %533 = vperm.xlu2 %739, %v824_v2  }
  0xbc   : > { %519 = vrot.lane.b32.xlu0 %v858_v19, %s767_s20 }
  0xbd   : > { %500 = vrot.lane.b32.xlu1 %v860_v20, %s766_s19 }
  0xbe   : > { %742 = vset.pattern.permute.xlu2 %v751_v0 }
  0xbf   : > { %554 = vperm.xlu2 %742, %v307_v15  }
  0xc4   : > { %542 = vperm.xlu0 %740, %v303_v23  }
  0xc5   : > { %521 = vrot.lane.b32.xlu1 %v860_v20, %s767_s20 }
  0xcd   : > { %549 = vperm.xlu1 %741, %v306_v14  }
  0xef   : > { %v388_v35 = vpop.permute.xlu2 %387 }
  0xf7   : > { %v409_v42 = vpop.permute.xlu2 %408 }
  0xff   : > { %v428_v61 = vpop.permute.xlu2 %427 }
 0x106   : > { %v364_v32 = vpop.permute.xlu0 %363 }
 0x107   : > { %v366_v31 = vpop.permute.xlu1 %365 }
 0x108   : > { %v368_v51 = vsel %vm367_vm4, %v364_v32, %v366_v31  ;;  %v369_v52 = vsel %vm367_vm4, %v366_v31, %v364_v32  ;;  %vm557_vm4 = vcmask 31744  }
 0x109   : > { %v374_v59 = vsel %vm921_vm8, %v369_v52, 0.0  ;;  %v375_v60 = vsel %vm913_vm7, %v368_v51, 0.0 }
 0x10a   : > { %v381_v2 = vmul.f32 %v379_v24, %v374_v59  ;;  %v382_v3 = vmul.f32 %v379_v24, %v375_v60 }
 0x10e   : > { %v430_v34 = vpop.permute.xlu0 %429 }
 0x10f   : > { %v386_v33 = vpop.permute.xlu1 %385  ;;  %v432_v9 = vsel %vm431_vm11, %v428_v61, %v430_v34  ;;  %v433_v10 = vsel %vm431_vm11, %v430_v34, %v428_v61 }
 0x110   : > { %v391_v47 = vsel %vm389_vm1, %v388_v35, %v386_v33  ;;  %v390_v57 = vsel %vm389_vm1, %v386_v33, %v388_v35  ;;  %v438_v18 = vsel %vm901_vm3, %v433_v10, 0.0  ;;  %v439_v21 = vsel %vm913_vm7, %v432_v9, 0.0 }
 0x111   : > { %v396_v58 = vsel %vm284_vm2, %v391_v47, 0.0  ;;  %v403_v1 = vmul.f32 %v400_v29, %v390_v57  ;;  %v444_v31 = vmul.f32 %v888_v28, %v438_v18  ;;  %v445_v32 = vmul.f32 %v888_v28, %v439_v21  ;;  %vm299_vm2 = vmand %vm287_vm13, %vm925_vm9 }
 0x112   : > { %v402_v0 = vmul.f32 %v400_v29, %v396_v58  ;;  %v513_v29 = vpop.permute.xlu2 %512  ;;  %v452_v47 = vmul.f32 %v884_v26, %v858_v19  ;;  %vm523_vm1 = vcmp.lt.s32.totalorder %v892_v37, 111 }
 0x113   : > { %v405_v17 = vadd.f32 %v403_v1, %v382_v3 }
 0x114   : > { %v404_v16 = vadd.f32 %v402_v0, %v381_v2 }
 0x116   : > { %v457_v39 = vpop.permute.xlu0 %456 }
 0x117   : > { %v407_v38 = vpop.permute.xlu1 %406 }
 0x118   : > { %v411_v55 = vsel %vm410_vm6, %v407_v38, %v409_v42  ;;  %v412_v56 = vsel %vm410_vm6, %v409_v42, %v407_v38 }
 0x119   : > { %v417_v62 = vsel %vm933_vm10, %v412_v56, 0.0  ;;  %v418_v63 = vsel %vm925_vm9, %v411_v55, 0.0 }
 0x11a   : > { %v423_v11 = vmul.f32 %v421_v25, %v417_v62  ;;  %v424_v12 = vmul.f32 %v421_v25, %v418_v63  ;;  %v534_v59 = vpop.permute.xlu2 %533 }
 0x11c   : > { %v425_v22 = vadd.f32 %v423_v11, %v404_v16  ;;  %v426_v23 = vadd.f32 %v424_v12, %v405_v17  ;;  %v304_v11 = vld [vmem:[%s1026_s5] sm:$0xff] }
 0x11e   : > { %v478_v48 = vpop.permute.xlu0 %477  ;;  %v446_v41 = vadd.f32 %v444_v31, %v425_v22  ;;  %v447_v42 = vadd.f32 %v445_v32, %v426_v23 }
 0x11f   : > { %v459_v46 = vpop.permute.xlu1 %458 }
 0x120   : > { %v461_v24 = vsel %vm460_vm12, %v457_v39, %v459_v46  ;;  %v462_v25 = vsel %vm460_vm12, %v459_v46, %v457_v39  ;;  %v454_v54 = vadd.f32 %v452_v47, %v446_v41 }
 0x121   : > { %v467_v36 = vsel %vm906_vm5, %v461_v24, 0.0  ;;  %v468_v38 = vsel %vm925_vm9, %v462_v25, 0.0 }
 0x122   : > { %v473_v49 = vmul.f32 %v886_v27, %v467_v36  ;;  %v474_v50 = vmul.f32 %v886_v27, %v468_v38  ;;  %v555_v23 = vpop.permute.xlu2 %554 }
 0x126   : > { %v499_v13 = vpop.permute.xlu0 %498 }
 0x127   : > { %v480_v8 = vpop.permute.xlu1 %479 }
 0x128   : > { %v482_v34 = vsel %vm481_vm14, %v478_v48, %v480_v8  ;;  %v483_v35 = vsel %vm481_vm14, %v480_v8, %v478_v48  ;;  %v453_v48 = vmul.f32 %v884_v26, %v860_v20  ;;  %v475_v20 = vadd.f32 %v473_v49, %v454_v54 }
 0x129   : > { %v488_v43 = vsel %vm901_vm3, %v482_v34, 0.0  ;;  %v489_v46 = vsel %vm970_vm0, %v483_v35, 0.0  ;;  %vm564_vm3 = vcmask 1043456  }
 0x12a   : > { %v455_v55 = vadd.f32 %v453_v48, %v447_v42  ;;  %v494_v56 = vmul.f32 %v890_v30, %v488_v43  ;;  %v495_v19 = vmul.f32 %v890_v30, %v489_v46 }
 0x12c   : > { %v476_v26 = vadd.f32 %v474_v50, %v455_v55  ;;  %v496_v60 = vadd.f32 %v494_v56, %v475_v20 }
 0x12e   : > { %v520_v52 = vpop.permute.xlu0 %519  ;;  %v497_v61 = vadd.f32 %v495_v19, %v476_v26 }
 0x12f   : > { %v501_v39 = vpop.permute.xlu1 %500 }
 0x130   : > { %v504_v28 = vsel %vm502_vm15, %v501_v39, %v499_v13  ;;  %v503_v51 = vsel %vm502_vm15, %v499_v13, %v501_v39 }
 0x131   : > { %v510_v44 = vsel %vm287_vm13, %v504_v28, 0.0  ;;  %v515_v57 = vmul.f32 %v513_v29, %v503_v51 }
 0x132   : > { %v516_v58 = vmul.f32 %v513_v29, %v510_v44 }
 0x133   : > { %v517_v37 = vadd.f32 %v515_v57, %v496_v60 }
 0x134   : > { %v518_v1 = vadd.f32 %v516_v58, %v497_v61 }
 0x136   : > { %v543_v8 = vpop.permute.xlu0 %542 }
 0x137   : > { %v522_v27 = vpop.permute.xlu1 %521 }
 0x138   : > { %v524_v62 = vsel %vm523_vm1, %v520_v52, %v522_v27  ;;  %v525_v63 = vsel %vm523_vm1, %v522_v27, %v520_v52 }
 0x139   : > { %v530_v30 = vsel %vm906_vm5, %v524_v62, 0.0  ;;  %v531_v0 = vsel %vm299_vm2, %v525_v63, 0.0 }
 0x13a   : > { %v536_v2 = vmul.f32 %v534_v59, %v530_v30  ;;  %v537_v3 = vmul.f32 %v534_v59, %v531_v0 }
 0x13c   : > { %v539_v9 = vadd.f32 %v537_v3, %v518_v1  ;;  %v538_v53 = vadd.f32 %v536_v2, %v517_v37 }
 0x13e   : > { %v545_v40 = vadd.f32 %v543_v8, %v538_v53  ;;  %v546_v10 = vadd.f32 %v543_v8, %v539_v9 }
 0x13f   : > { %v550_v12 = vpop.permute.xlu1 %549 }
 0x140   : > { %695 = vmatpush.msk.msra.mxu2 %vm564_vm3, %v545_v40  ;;  %698 = vmatpush.msk.msra.mxu3 %vm564_vm3, %v546_v10 }
 0x141   : > { %696 = vmatmul.msk.f32.vlgmr.msra.gmra.mxu2 %vm557_vm4, %v304_v11  ;;  %699 = vmatmul.msk.f32.vlgmr.msra.gmra.mxu3 %vm557_vm4, %v304_v11 }
 0x149   : > { %697 = vmatmul.msk.f32.gmra.mxu2 %vm557_vm4, %v305_v45  ;;  %700 = vmatmul.msk.f32.gmra.mxu3 %vm557_vm4, %v305_v45 }
 0x1c4   : > { %v588_v13 = vpop.f32.mrf.mxu2  ;;  %v611_v14 = vpop.f32.mrf.mxu3 }
 0x1c5   : > { %v589_v15 = vadd.f32 %v588_v13, %v550_v12  ;;  %v612_v16 = vadd.f32 %v611_v14, %v550_v12 }
 0x1c7   : > { %v617_v17 = vadd.f32 %v589_v15, %v840_v6  ;;  %v618_v18 = vadd.f32 %v612_v16, %v844_v7 }
 0x1c9   : > { %v621_v21 = vmax.f32 %v617_v17, 0.0  ;;  %v622_v22 = vmax.f32 %v618_v18, 0.0 }
 0x1cb   : > { %625 = vst [vmem:[%s278_s13] sm:$0xff] %v621_v21 }
 0x1cc   : > { %626 = vst [vmem:[%s278_s13 + $0x8] sm:$0xff] %v622_v22  ;;  %v591_v24 = vpop.f32.mrf.mxu2  ;;  %v614_v25 = vpop.f32.mrf.mxu3 }
 0x1cd   : > { %v592_v29 = vadd.f32 %v591_v24, %v555_v23  ;;  %v615_v31 = vadd.f32 %v614_v25, %v555_v23 }
 0x1cf   : > { %v619_v32 = vadd.f32 %v592_v29, %v836_v4  ;;  %v620_v6 = vadd.f32 %v615_v31, %v838_v5 }
 0x1d1   : > { %v623_v33 = vmax.f32 %v619_v32, 0.0  ;;  %v624_v7 = vmax.f32 %v620_v6, 0.0 }
 0x1d3   : > { %627 = vst [vmem:[%s278_s13 + $0x10] sm:$0xff] %v623_v33 }
 0x1d4   : > { %628 = vst [vmem:[%s278_s13 + $0x18] sm:$0xff] %v624_v7 }
 0x1d5 PF: > { %s17_s24 = sadd.s32 1, %s749_s24  }
 0x1d6   : > { %p14_p4 = scmp.ge.s32.totalorder %s17_s24, 4  }
 0x1d8   :  { %16 = sbr.rel (!%p14_p4) target bundleno = 1 (0x1), region = 78 }

</bundles_post_ra>
